<compile_context>
chip_gen: v6e
topology: v6e:2x2x1
jax: 0.10.0
libtpu: 0.0.40
codegen_flags: <defaults>
</compile_context>

<pallas_src>
import math

import jax
import jax.numpy as jnp
from jax.experimental import pallas as pl
from jax.experimental.pallas import tpu as pltpu


def _round_up(n, m):
    return ((n + m - 1) // m) * m


# ------------------------------- kernel --------------------------------------

def _time_pos_enc_kernel(t_ref, div_ref, shift_ref, o_ref):
    # t_ref:     (block_rows, 1)  event times
    # div_ref:   (1, d_model)     frequency terms (constant, fetched once)
    # shift_ref: (1, d_model)     0 for even lanes, pi/2 for odd lanes
    t = t_ref[...].astype(jnp.float32)                       # (R, 1)
    phase = t * div_ref[...] + shift_ref[...]                # (R, D) fp32
    o_ref[...] = jnp.sin(phase).astype(o_ref.dtype)          # sin / cos fused


# ------------------------------ wrapper ---------------------------------------

def make_div_term(d_model, dtype=jnp.float32):
    """Matches the PyTorch buffer: exp((2*(i//2)).float() * -(log(10000)/d_model))."""
    i = jnp.arange(d_model)
    return jnp.exp((2.0 * (i // 2)).astype(jnp.float32)
                   * (-math.log(10000.0) / d_model)).astype(dtype)


def time_positional_encoding(x, div_term, *, block_rows=1024,
                             vmem_budget_bytes=16 * 1024 * 1024):
    """x: [batch, seq] times  ->  [batch, seq, d_model] temporal encoding."""
    b, s = x.shape
    d = div_term.shape[0]
    rows = b * s
    out_dtype = x.dtype

    # dtype-aware sublane multiple: 8 for 32-bit outputs, 16 for 16-bit.
    sub = 16 if jnp.dtype(out_dtype).itemsize == 2 else 8

    # Cap the row tile against a conservative VMEM budget (output tile is
    # double-buffered by the Pallas pipeline; input tile is tiny).
    bytes_per_row = 2 * d * jnp.dtype(out_dtype).itemsize + 2 * 4
    max_block = max(sub, (vmem_budget_bytes // bytes_per_row) // sub * sub)
    block = min(_round_up(block_rows, sub), max_block, _round_up(rows, sub))

    # Ragged row counts: pad to the tile size, slice the result back.
    padded = _round_up(rows, block)
    t2d = x.reshape(rows, 1).astype(jnp.float32)
    if padded != rows:
        t2d = jnp.pad(t2d, ((0, padded - rows), (0, 0)))

    # (1, d) constants; constant index_map -> the same block is reused every
    # grid step (no re-DMA between steps).
    div2d = div_term.reshape(1, d).astype(jnp.float32)
    lane = jnp.arange(d)
    shift2d = ((lane % 2).astype(jnp.float32) * (math.pi / 2.0)).reshape(1, d)

    grid = (padded // block,)
    out = pl.pallas_call(
        _time_pos_enc_kernel,
        out_shape=jax.ShapeDtypeStruct((padded, d), out_dtype),
        grid=grid,
        in_specs=[
            pl.BlockSpec((block, 1), lambda i: (i, 0)),
            pl.BlockSpec((1, d), lambda i: (0, 0)),
            pl.BlockSpec((1, d), lambda i: (0, 0)),
        ],
        out_specs=pl.BlockSpec((block, d), lambda i: (i, 0)),
        compiler_params=pltpu.CompilerParams(
            dimension_semantics=("parallel",)),
    )(t2d, div2d, shift2d)
    return out[:rows].reshape(b, s, d)


# --------------------------------- demo ---------------------------------------

if __name__ == "__main__":
    def ref_fn(x, div_term):
        # Faithful pure-JAX reference of the PyTorch forward.
        res = x[..., None] * div_term
        even = (jnp.arange(div_term.shape[0]) % 2) == 0
        return jnp.where(even, jnp.sin(res), jnp.cos(res))

    key = jax.random.PRNGKey(0)

    # Case 1: batch=2, seq=8, d_model=128 (rows divide the tile exactly).
    d_model = 128
    div_term = make_div_term(d_model)
    dt = jax.random.uniform(key, (2, 8), dtype=jnp.float32)
    times = jnp.cumsum(dt, axis=-1)                 # monotone event times
    out = time_positional_encoding(times, div_term)
    out = jax.block_until_ready(out)
    assert out.shape == (2, 8, d_model)
    assert jnp.allclose(out, ref_fn(times, div_term), atol=1e-5, rtol=1e-5), \
        "case-1 mismatch"

    # Case 2: ragged rows (batch=3, seq=5) and a smaller d_model=64
    # to exercise the padding / full-lane-dim path.
    d_model2 = 64
    div_term2 = make_div_term(d_model2)
    dt2 = jax.random.uniform(jax.random.PRNGKey(1), (3, 5), dtype=jnp.float32)
    times2 = jnp.cumsum(dt2, axis=-1)
    out2 = time_positional_encoding(times2, div_term2)
    out2 = jax.block_until_ready(out2)
    assert out2.shape == (3, 5, d_model2)
    assert jnp.allclose(out2, ref_fn(times2, div_term2), atol=1e-5, rtol=1e-5), \
        "case-2 mismatch"

    print("KERNEL_OK")
</pallas_src>

<mosaic_0001>
module attributes {stable_mosaic.version = 11 : i64} {
  func.func @_time_pos_enc_kernel(%arg0: i32, %arg1: memref<16x1xf32, #tpu.memory_space<vmem>>, %arg2: memref<1x128xf32, #tpu.memory_space<vmem>>, %arg3: memref<1x128xf32, #tpu.memory_space<vmem>>, %arg4: memref<16x128xf32, #tpu.memory_space<vmem>>) attributes {dimension_semantics = [#tpu.dimension_semantics<parallel>], iteration_bounds = array<i64: 1>, scalar_prefetch = 0 : i64, scratch_operands = 0 : i64, tpu.core_type = #tpu.core_type<tc>, window_params = [{transform_indices = @transform_0, window_bounds = array<i64: 16, 1>}, {pipeline_mode = #tpu.pipeline_mode<synchronous>, transform_indices = @transform_1, window_bounds = array<i64: 1, 128>}, {pipeline_mode = #tpu.pipeline_mode<synchronous>, transform_indices = @transform_2, window_bounds = array<i64: 1, 128>}, {transform_indices = @transform_3, window_bounds = array<i64: 16, 128>}]} {
    %c0 = arith.constant 0 : index
    %c0_0 = arith.constant 0 : index
    %0 = vector.load %arg1[%c0, %c0_0] : memref<16x1xf32, #tpu.memory_space<vmem>>, vector<16x1xf32>
    %c0_1 = arith.constant 0 : index
    %c0_2 = arith.constant 0 : index
    %1 = vector.load %arg2[%c0_1, %c0_2] : memref<1x128xf32, #tpu.memory_space<vmem>>, vector<1x128xf32>
    %2 = vector.broadcast %0 : vector<16x1xf32> to vector<16x128xf32>
    %3 = vector.broadcast %1 : vector<1x128xf32> to vector<16x128xf32>
    %4 = arith.mulf %2, %3 : vector<16x128xf32>
    %c0_3 = arith.constant 0 : index
    %c0_4 = arith.constant 0 : index
    %5 = vector.load %arg3[%c0_3, %c0_4] : memref<1x128xf32, #tpu.memory_space<vmem>>, vector<1x128xf32>
    %6 = vector.broadcast %5 : vector<1x128xf32> to vector<16x128xf32>
    %7 = arith.addf %4, %6 : vector<16x128xf32>
    %8 = math.sin %7 : vector<16x128xf32>
    %c0_5 = arith.constant 0 : index
    %c0_6 = arith.constant 0 : index
    %9 = vector.load %arg4[%c0_5, %c0_6] : memref<16x128xf32, #tpu.memory_space<vmem>>, vector<16x128xf32>
    tpu.vector_store %arg4[%c0_5, %c0_6], %8 {strides = array<i32>} : memref<16x128xf32, #tpu.memory_space<vmem>>, vector<16x128xf32>,
    return
  }
  func.func @transform_0(%arg0: i32) -> (i32, i32) {
    %c0_i32 = arith.constant 0 : i32
    %c0_i32_0 = arith.constant 0 : i32
    return %arg0, %c0_i32 : i32, i32
  }
  func.func @transform_1(%arg0: i32) -> (i32, i32) {
    %c0_i32 = arith.constant 0 : i32
    %c0_i32_0 = arith.constant 0 : i32
    %c0_i32_1 = arith.constant 0 : i32
    return %c0_i32, %c0_i32_0 : i32, i32
  }
  func.func @transform_2(%arg0: i32) -> (i32, i32) {
    %c0_i32 = arith.constant 0 : i32
    %c0_i32_0 = arith.constant 0 : i32
    %c0_i32_1 = arith.constant 0 : i32
    return %c0_i32, %c0_i32_0 : i32, i32
  }
  func.func @transform_3(%arg0: i32) -> (i32, i32) {
    %c0_i32 = arith.constant 0 : i32
    %c0_i32_0 = arith.constant 0 : i32
    return %arg0, %c0_i32 : i32, i32
  }
}

</mosaic_0001>

<bundles_post_ra>
// kernel: tpu_custom_call.1
= control target key start
LH: loop header
LB: loop body
LE: loop exit
PB: predicated region body
PF: predicated region fallthrough
CT: control target
= control target key end

     0   :  { %v330_v1 = vmov 0   ;;  %s443_s0 = inlined_call_operand.vmem [shape: f32[16,1], index: 0, kind: input, shape index: {}]   ;;  %s444_s1 = inlined_call_operand.vmem [shape: f32[1,128], index: 1, kind: input, shape index: {}]   ;;  %s445_s2 = inlined_call_operand.vmem [shape: f32[1,128], index: 2, kind: input, shape index: {}]   ;;  %s446_s3 = inlined_call_operand.hbm [shape: f32[16,128], index: 3, kind: output, shape index: {}]  }
   0x1   :  { %v15_v0 = vld [vmem:[%s443_s0] sm:$0xff]  ;;  %299 = vset.pattern.permute.xlu0 %v330_v1  ;;  %v16_v2 = vld [vmem:[%s443_s0 + $0x8] sm:$0xff] }
   0x2   :  { %20 = vperm.xlu0 %299, %v15_v0  }
   0x3   :  { %8 = vsyncpa [#allocation3], 0  ;;  %v271_v3 = vld [vmem:[%s444_s1] ss:$0 sm:$0xff]  ;;  %v331_v27 = vmov 683565275  }
   0x4   :  { %v272_v4 = vld [vmem:[%s445_s2] ss:$0 sm:$0xff]  ;;  %v332_v31 = vmov 2475754826   ;;  %v333_v33 = vmov 2131351028  }
   0x5   :  { %v334_v35 = vmov 2102212464   ;;  %v335_v37 = vmov 920167782   ;;  %v336_v44 = vmov 1326507024  }
   0x6   :  { %25 = vperm.xlu0 %299, %v16_v2   ;;  %s337_s0 = smov [#allocation2]  }
   0x7   :  { %s260_s1 = sshll.u32 %s337_s0, 4  ;;  %s261_s1 = int_to_ptr.vmem [resolvable:$true] %s260_s1 }
   0x8   :  { %s308_s2 = scalar_lea.vmem %s261_s1, 256  ;;  %p313_p1 = scmp.lt.s32.totalorder %s261_s1, %s261_s1 }
   0x9   :  { %p309_p0 = scmp.ne.s32.totalorder %s261_s1, %s308_s2  ;;  %p314_p2 = scmp.lt.s32.totalorder %s308_s2, %s308_s2 }
   0xb   :  { %p315_p3 = por %p314_p2, %p313_p1 }
   0xd   :  { %p316_p4 = pnand %p315_p3, %p309_p0 }
  0x7d   :  { %v21_v5 = vpop.permute.xlu0 %20 }
  0x7e   :  { %v34_v6 = vmul.f32 %v271_v3, %v21_v5 }
  0x80   :  { %v372_v7 = vadd.f32 %v272_v4, %v34_v6 }
  0x81   :  { %v26_v8 = vpop.permute.xlu0 %25 }
  0x82   :  { %v45_v9 = vand.u32 2147483647, %v372_v7  ;;  %v48_v10 = vand.u32 2139095040, %v372_v7  ;;  %v35_v11 = vmul.f32 %v271_v3, %v26_v8  ;;  %vm47_vm14 = vcmp.lt.s32.totalorder %v372_v7, 0 }
  0x84   :  { %v49_v12 = vshrl.u32 %v48_v10, 23  ;;  %v376_v13 = vadd.f32 %v272_v4, %v35_v11  ;;  %v52_v14 = vand.u32 8388607, %v45_v9  ;;  %vm46_vm15 = vcmp.le.f32.partialorder %v45_v9, 0.7853982 }
  0x86   :  { %v273_v15 = vadd.s32 4294967169, %v49_v12  ;;  %v152_v16 = vand.u32 2139095040, %v376_v13  ;;  %v53_v18 = vor.u32 8388608, %v52_v14  ;;  %v149_v20 = vand.u32 2147483647, %v376_v13 }
  0x88   :  { %v55_v17 = vadd.s32 1, %v273_v15  ;;  %v153_v19 = vshrl.u32 %v152_v16, 23  ;;  %v382_v25 = vshll.u32 %v53_v18, 8  ;;  %v156_v29 = vand.u32 8388607, %v149_v20 }
  0x8a   :  { %vm56_vm0 = vcmp.gt.s32.totalorder %v55_v17, 0  ;;  %v277_v22 = vadd.s32 4294967169, %v153_v19  ;;  %v157_v59 = vor.u32 8388608, %v156_v29 }
  0x8b   :  { %v57_v21 = vsel %vm56_vm0, %v55_v17, 0  ;;  %vm151_vm0 = vcmp.lt.s32.totalorder %v376_v13, 0 }
  0x8c   :  { %v58_v23 = vshrl.u32 %v57_v21, 5  ;;  %v59_v24 = vand.u32 31, %v57_v21  ;;  %v159_v30 = vadd.s32 1, %v277_v22  ;;  %v197_v10 = vshll.u32 %v157_v59, 8 }
  0x8e   :  { %v60_v26 = vsub.s32 32, %v59_v24  ;;  %v62_v28 = vshll.u32 %v331_v27, %v59_v24  ;;  %v65_v32 = vshll.u32 %v332_v31, %v59_v24  ;;  %v68_v34 = vshll.u32 %v333_v33, %v59_v24 }
  0x8f   :  { %v71_v36 = vshll.u32 %v334_v35, %v59_v24  ;;  %v74_v38 = vshll.u32 %v335_v37, %v59_v24  ;;  %vm77_vm1 = vcmp.lt.s32.totalorder %v58_v23, 1  ;;  %vm79_vm2 = vcmp.lt.s32.totalorder %v58_v23, 3 }
  0x90   :  { %v63_v39 = vshrl.u32 %v332_v31, %v60_v26  ;;  %v66_v40 = vshrl.u32 %v333_v33, %v60_v26  ;;  %v69_v41 = vshrl.u32 %v334_v35, %v60_v26  ;;  %v61_v42 = vshrl.u32 %v331_v27, %v60_v26 }
  0x91   :  { %v72_v43 = vshrl.u32 %v335_v37, %v60_v26  ;;  %v75_v45 = vshrl.u32 %v336_v44, %v60_v26  ;;  %vm160_vm3 = vcmp.gt.s32.totalorder %v159_v30, 0  ;;  %vm80_vm4 = vcmp.lt.s32.totalorder %v58_v23, 4 }
  0x92   :  { %v64_v46 = vor.u32 %v63_v39, %v62_v28  ;;  %v67_v47 = vor.u32 %v66_v40, %v65_v32  ;;  %v70_v48 = vor.u32 %v69_v41, %v68_v34  ;;  %v161_v51 = vsel %vm160_vm3, %v159_v30, 0 }
  0x93   :  { %v73_v49 = vor.u32 %v72_v43, %v71_v36  ;;  %v76_v50 = vor.u32 %v75_v45, %v74_v38  ;;  %vm78_vm5 = vcmp.lt.s32.totalorder %v58_v23, 2  ;;  %v163_v62 = vand.u32 31, %v161_v51 }
  0x94   :  { %v81_v52 = vsel %vm77_vm1, %v61_v42, %v64_v46  ;;  %v82_v53 = vsel %vm80_vm4, %v70_v48, 2102212464  ;;  %v85_v54 = vsel %vm77_vm1, %v64_v46, %v67_v47  ;;  %v89_v55 = vsel %vm77_vm1, %v67_v47, %v70_v48 }
  0x95   :  { %v83_v56 = vsel %vm79_vm2, %v67_v47, %v82_v53  ;;  %v86_v57 = vsel %vm80_vm4, %v73_v49, 920167782  ;;  %v90_v58 = vsel %vm80_vm4, %v76_v50, 1326507024  ;;  %v162_v6 = vshrl.u32 %v161_v51, 5 }
  0x96   :  { %v87_v60 = vsel %vm79_vm2, %v70_v48, %v86_v57  ;;  %v91_v61 = vsel %vm79_vm2, %v73_v49, %v90_v58  ;;  %v84_v63 = vsel %vm78_vm5, %v81_v52, %v83_v56  ;;  %v164_v8 = vsub.s32 32, %v163_v62 }
  0x97   :  { %v88_v0 = vsel %vm78_vm5, %v85_v54, %v87_v60  ;;  %v92_v1 = vsel %vm78_vm5, %v89_v55, %v91_v61  ;;  %v100_v11 = vmul.u32 %v382_v25, %v84_v63  ;;  %v166_v12 = vshll.u32 %v331_v27, %v163_v62 }
  0x98   :  { %v395_v2 = vmul.u32.u64.low %v382_v25, %v92_v1  ;;  %v396_v3 = vmul.u32.u64.high %v382_v25, %v92_v1, %v395_v2  ;;  %v399_v4 = vmul.u32.u64.low %v382_v25, %v88_v0  ;;  %v400_v5 = vmul.u32.u64.high %v382_v25, %v88_v0, %v399_v4 }
  0x99   :  { %v169_v14 = vshll.u32 %v332_v31, %v163_v62  ;;  %v172_v15 = vshll.u32 %v333_v33, %v163_v62  ;;  %v167_v16 = vshrl.u32 %v332_v31, %v164_v8  ;;  %v170_v17 = vshrl.u32 %v333_v33, %v164_v8 }
  0x9a   :  { %v173_v18 = vshrl.u32 %v334_v35, %v164_v8  ;;  %v175_v19 = vshll.u32 %v334_v35, %v163_v62  ;;  %vm102_vm6 = vc.u32 %v396_v3, %v399_v4  ;;  %v103_v21 = vadd.s32 1, %v400_v5 }
  0x9b   :  { %v176_v22 = vshrl.u32 %v335_v37, %v164_v8  ;;  %v178_v23 = vshll.u32 %v335_v37, %v163_v62  ;;  %v168_v24 = vor.u32 %v167_v16, %v166_v12  ;;  %v171_v26 = vor.u32 %v170_v17, %v169_v14 }
  0x9c   :  { %v174_v28 = vor.u32 %v173_v18, %v172_v15  ;;  %v179_v29 = vshrl.u32 %v336_v44, %v164_v8  ;;  %v104_v25 = vsel %vm102_vm6, %v103_v21, %v400_v5  ;;  %vm181_vm7 = vcmp.lt.s32.totalorder %v162_v6, 1 }
  0x9d   :  { %v177_v30 = vor.u32 %v176_v22, %v175_v19  ;;  %vm184_vm8 = vcmp.lt.s32.totalorder %v162_v6, 4  ;;  %v105_v31 = vadd.s32 %v104_v25, %v100_v11  ;;  %vm183_vm9 = vcmp.lt.s32.totalorder %v162_v6, 3 }
  0x9e   :  { %v180_v32 = vor.u32 %v179_v29, %v178_v23  ;;  %v186_v33 = vsel %vm184_vm8, %v174_v28, 2102212464  ;;  %v165_v34 = vshrl.u32 %v331_v27, %v164_v8  ;;  %v189_v35 = vsel %vm181_vm7, %v168_v24, %v171_v26 }
  0x9f   :  { %v190_v36 = vsel %vm184_vm8, %v177_v30, 920167782  ;;  %v193_v38 = vsel %vm181_vm7, %v171_v26, %v174_v28  ;;  %v106_v39 = vadd.s32 536870912, %v105_v31  ;;  %vm182_vm10 = vcmp.lt.s32.totalorder %v162_v6, 2 }
  0xa0   :  { %v191_v37 = vsel %vm183_vm9, %v174_v28, %v190_v36  ;;  %v194_v40 = vsel %vm184_vm8, %v180_v32, 1326507024  ;;  %v185_v41 = vsel %vm181_vm7, %v165_v34, %v168_v24  ;;  %v187_v42 = vsel %vm183_vm9, %v171_v26, %v186_v33 }
  0xa1   :  { %v192_v43 = vsel %vm182_vm10, %v189_v35, %v191_v37  ;;  %v195_v44 = vsel %vm183_vm9, %v177_v30, %v194_v40  ;;  %v107_v45 = vshrl.u32 %v106_v39, 30  ;;  %v188_v51 = vsel %vm182_vm10, %v185_v41, %v187_v42 }
  0xa2   :  { %v196_v46 = vsel %vm182_vm10, %v193_v38, %v195_v44  ;;  %v410_v47 = vmul.u32.u64.low %v197_v10, %v192_v43  ;;  %v411_v48 = vmul.u32.u64.high %v197_v10, %v192_v43, %v410_v47  ;;  %v204_v54 = vmul.u32 %v197_v10, %v188_v51 }
  0xa3   :  { %v413_v49 = vmul.u32.u64.low %v197_v10, %v196_v46  ;;  %v414_v50 = vmul.u32.u64.high %v197_v10, %v196_v46, %v413_v49  ;;  %v108_v27 = vshll.u32 %v107_v45, 30  ;;  %v101_v2 = vadd.s32 %v399_v4, %v396_v3 }
  0xa4   :  { %v207_v53 = vadd.s32 1, %v411_v48  ;;  %v131_v29 = vsub.s32 4, %v107_v45  ;;  %vm429_vm1 = vcmp.le.f32.partialorder %v149_v20, 0.7853982  ;;  %vm137_vm5 = vweird.f32 %v372_v7 }
  0xa5   :  { %v109_v52 = vsub.s32 %v105_v31, %v108_v27  ;;  %vm206_vm11 = vc.u32 %v414_v50, %v410_v47  ;;  %v205_v26 = vadd.s32 %v410_v47, %v414_v50  ;;  %vm241_vm9 = vweird.f32 %v376_v13 }
  0xa6   :  { %v208_v56 = vsel %vm206_vm11, %v207_v53, %v411_v48  ;;  %v132_v36 = vsel %vm47_vm14, %v131_v29, %v107_v45 }
  0xa7   :  { %v111_v55 = vsub.s32 0, %v109_v52  ;;  %v209_v57 = vadd.s32 %v208_v56, %v204_v54  ;;  %v134_v40 = vsel %vm46_vm15, 0, %v132_v36 }
  0xa8   :  { %v138_v43 = vadd.s32 3, %v134_v40 }
  0xa9   :  { %v274_v58 = vmin.u32 %v111_v55, %v109_v52  ;;  %v210_v59 = vadd.s32 536870912, %v209_v57 }
  0xaa   :  { %v139_v47 = vand.u32 3, %v138_v43 }
  0xab   :  { %v113_v60 = vclz %v274_v58  ;;  %v211_v61 = vshrl.u32 %v210_v59, 30 }
  0xac   :  { %vm144_vm2 = vcmp.eq.s32.totalorder %v139_v47, 2  ;;  %vm141_vm3 = vcmp.eq.s32.totalorder %v139_v47, 0  ;;  %vm140_vm4 = vcmp.lt.s32.totalorder %v139_v47, 2 }
  0xad   :  { %v275_v62 = vadd.s32 4294967294, %v113_v60  ;;  %v212_v63 = vshll.u32 %v211_v61, 30  ;;  %v235_v44 = vsub.s32 4, %v211_v61 }
  0xaf   :  { %vm276_vm12 = vcmp.lt.s32.totalorder %v275_v62, 0  ;;  %v213_v1 = vsub.s32 %v209_v57, %v212_v63  ;;  %v236_v48 = vsel %vm151_vm0, %v235_v44, %v211_v61 }
  0xb0   :  { %v116_v0 = vsel %vm276_vm12, 0, %v275_v62  ;;  %v238_v20 = vsel %vm429_vm1, 0, %v236_v48 }
  0xb1   :  { %v117_v5 = vsub.s32 32, %v116_v0  ;;  %v121_v6 = vsub.s32 4294967266, %v116_v0  ;;  %v215_v8 = vsub.s32 0, %v213_v1  ;;  %v118_v10 = vshll.u32 %v109_v52, %v116_v0 }
  0xb2   :  { %v242_v55 = vadd.s32 3, %v238_v20 }
  0xb3   :  { %v119_v11 = vshrl.u32 %v101_v2, %v117_v5  ;;  %v122_v12 = vadd.s32 127, %v121_v6  ;;  %v278_v14 = vmin.u32 %v215_v8, %v213_v1 }
  0xb4   :  { %v243_v57 = vand.u32 3, %v242_v55 }
  0xb5   :  { %v120_v15 = vor.u32 %v119_v11, %v118_v10  ;;  %v123_v16 = vshll.u32 %v122_v12, 23  ;;  %v217_v17 = vclz %v278_v14 }
  0xb6   :  { %vm248_vm6 = vcmp.eq.s32.totalorder %v243_v57, 2  ;;  %vm245_vm7 = vcmp.eq.s32.totalorder %v243_v57, 0  ;;  %vm244_vm8 = vcmp.lt.s32.totalorder %v243_v57, 2 }
  0xb7   :  { %v124_v18 = vor.u32 4788187, %v123_v16  ;;  %v279_v19 = vadd.s32 4294967294, %v217_v17  ;;  %v127_v22 = vcvt.s32.f32 %v120_v15 }
  0xb9   :  { %v125_v21 = vand.u32 2147483647, %v124_v18  ;;  %vm280_vm13 = vcmp.lt.s32.totalorder %v279_v19, 0 }
  0xba   :  { %v220_v24 = vsel %vm280_vm13, 0, %v279_v19 }
  0xbb   :  { %v128_v23 = vmul.f32 %v127_v22, %v125_v21  ;;  %v221_v3 = vsub.s32 32, %v220_v24  ;;  %v225_v4 = vsub.s32 4294967266, %v220_v24  ;;  %v222_v25 = vshll.u32 %v213_v1, %v220_v24 }
  0xbd   :  { %v129_v28 = vxor.u32 2147483648, %v128_v23  ;;  %v223_v30 = vshrl.u32 %v205_v26, %v221_v3  ;;  %v226_v31 = vadd.s32 127, %v225_v4 }
  0xbf   :  { %v130_v32 = vsel %vm47_vm14, %v129_v28, %v128_v23  ;;  %v224_v34 = vor.u32 %v223_v30, %v222_v25  ;;  %v227_v35 = vshll.u32 %v226_v31, 23 }
  0xc0   :  { %v133_v33 = vsel %vm46_vm15, %v372_v7, %v130_v32 }
  0xc1   :  { %300 = vcosq.f32 %v133_v33  ;;  %v228_v38 = vor.u32 4788187, %v227_v35  ;;  %v231_v37 = vcvt.s32.f32 %v224_v34 }
  0xc2   :  { %302 = vsinq.f32 %v133_v33 }
  0xc3   :  { %v229_v39 = vand.u32 2147483647, %v228_v38 }
  0xc5   :  { %v232_v41 = vmul.f32 %v231_v37, %v229_v39 }
  0xc7   :  { %v233_v42 = vxor.u32 2147483648, %v232_v41 }
  0xc9   :  { %v234_v46 = vsel %vm151_vm0, %v233_v42, %v232_v41 }
  0xca   :  { %v237_v45 = vsel %vm429_vm1, %v376_v13, %v234_v46 }
  0xcb   :  { %304 = vcosq.f32 %v237_v45 }
  0xcc   :  { %306 = vsinq.f32 %v237_v45 }
  0xce   :  { %v301_v49 = vpop.eup %300 }
  0xcf   :  { %v303_v50 = vpop.eup %302  ;;  %v145_v27 = vxor.u32 2147483648, %v301_v49 }
  0xd0   :  { %v142_v51 = vxor.u32 2147483648, %v303_v50 }
  0xd1   :  { %v146_v52 = vsel %vm144_vm2, %v145_v27, %v303_v50 }
  0xd2   :  { %v143_v53 = vsel %vm141_vm3, %v301_v49, %v142_v51 }
  0xd3   :  { %v147_v54 = vsel %vm140_vm4, %v143_v53, %v146_v52 }
  0xd4   :  { %v148_v56 = vsel %vm137_vm5, nan, %v147_v54 }
  0xd5   :  { %253 = vst [vmem:[#allocation2] sm:$0xff] %v148_v56 }
  0xd8   :  { %v305_v58 = vpop.eup %304 }
  0xd9   :  { %v307_v59 = vpop.eup %306  ;;  %v249_v60 = vxor.u32 2147483648, %v305_v58 }
  0xda   :  { %v246_v61 = vxor.u32 2147483648, %v307_v59 }
  0xdb   :  { %v250_v62 = vsel %vm248_vm6, %v249_v60, %v307_v59 }
  0xdc   :  { %v247_v63 = vsel %vm245_vm7, %v305_v58, %v246_v61 }
  0xdd   :  { %v251_v0 = vsel %vm244_vm8, %v247_v63, %v250_v62 }
  0xde   :  { %v252_v7 = vsel %vm241_vm9, nan, %v251_v0 }
  0xdf   :  { %254 = vst [vmem:[#allocation2 + $0x8] sm:$0xff] %v252_v7 }
  0xe0   :  { %319 = shalt.err (!%p316_p4)
}
  0xe1   :  { %s338_s20 = smov 128   ;;  %s339_s21 = smov 8  }
  0xe2   :  { %266 = dma.vmem_to_hbm [thread:$0]  %s261_s1, 256, %s446_s3, [#allocation3], %s338_s20, %s338_s20, %s339_s21  }
  0xe3   :  { %328 = dma.done.wait [#allocation3], 256  }
  0xe4   :  { %329 = vsyncadd [#allocation3], 4294967040 }
  0xe5   :  { %270 = vsyncpa [#allocation3], 1 }

</bundles_post_ra>
